<compile_context>
chip_gen: v5e
topology: v5e:2x2
jax: 0.10.0
libtpu: 0.0.40
codegen_flags: <defaults>
</compile_context>

<pallas_src>
import math

import jax
import jax.numpy as jnp
from jax.experimental import pallas as pl
from jax.experimental.pallas import tpu as pltpu


def _project(act, w, b):
    """(bt, s, H) activations @ (H, Ha) bf16 weight + (1, Ha) f32 bias -> (bt, s, Ha) f32.

    Collapses (bt, s) into a single MXU matmul when s is a sublane multiple
    (free reshape); otherwise keeps a batched dot_general to avoid a hidden
    per-step relayout copy (review item on reshape guards)."""
    bt, s, h = act.shape
    ha = w.shape[1]
    a16 = act.astype(jnp.bfloat16)
    if s % 8 == 0:
        out = jnp.dot(a16.reshape(bt * s, h), w,
                      preferred_element_type=jnp.float32).reshape(bt, s, ha)
    else:
        out = jax.lax.dot_general(a16, w, (((2,), (0,)), ((), ())),
                                  preferred_element_type=jnp.float32)
    return out + b


def _twostage_kernel(qx_ref, x_ref, wq_ref, bq_ref, wk_ref, bk_ref, c_ref,
                     out_ref, q_scratch):
    """Grid step = (batch tile i, key tile j).

    qx_ref : (bt, Sq, H)          x_ref : (bt, skt, H)
    wq/wk  : (H, H+1) bf16  (pre-transposed; 1/sqrt(H) folded into wq; last
             column of wq is zero, last column of wk is the fused
             value->nn_tmp->nn_output head w_vo)
    bq/bk  : (1, H+1) f32   (last element of bk is b_vo, of bq is 0)
    c_ref  : (1,) f32 in SMEM (= bt @ Wo^T + bo)
    out    : (bt, Sq) f32, resident across j (accumulator)
    q_scratch : (bt, Sq, H+1) bf16 VMEM — Q projection cached across key tiles
    """
    j = pl.program_id(1)
    bt, sq, _ = qx_ref.shape
    ha = wk_ref.shape[1]

    @pl.when(j == 0)
    def _():
        # Q projection once per batch tile; init the output accumulator with c.
        q = _project(qx_ref[...], wq_ref[...], bq_ref[...])
        q_scratch[...] = q.astype(jnp.bfloat16)
        out_ref[...] = jnp.broadcast_to(c_ref[0], (bt, sq)).astype(out_ref.dtype)

    # Augmented K projection: columns 0..H-1 = key1(x); column H is the fused
    # value/output head  vs[b,k] = x[b,k,:] @ w_vo + b_vo  (free on the MXU).
    k_aug = _project(x_ref[...], wk_ref[...], bk_ref[...])        # (bt, skt, H+1) f32
    vs = k_aug[:, :, ha - 1]                                      # (bt, skt)

    # Scores; 1/sqrt(H) already folded into wq, and wq's zero pad column makes
    # the vs column contribute nothing to the contraction.
    s = jnp.einsum("bqh,bkh->bqk", q_scratch[...], k_aug.astype(jnp.bfloat16),
                   preferred_element_type=jnp.float32)            # (bt, Sq, skt)

    # Softmax over the *query* axis (torch dim=1): every key column is
    # normalized independently, so key tiles need no cross-tile state.
    m = jnp.max(s, axis=1, keepdims=True)                         # (bt, 1, skt)
    e = jnp.exp(s - m)
    denom = jnp.sum(e, axis=1)                                    # (bt, skt)
    # Fold the reciprocal into the per-key output weight instead of scaling the
    # full (bt, Sq, skt) score tensor; `a` is never materialized.
    w = vs * pl.reciprocal(denom, approx=True)                    # (bt, skt)

    out_ref[...] += jnp.sum(e * w[:, None, :], axis=-1).astype(out_ref.dtype)


def prepare_params(params):
    """One-time weight preprocessing (outside the per-call path)."""
    H = params["wq"].shape[0]
    inv_sqrt_h = 1.0 / math.sqrt(H)

    # Fused value1 -> nn_tmp -> nn_output head:
    #   nn_output(nn_tmp(a @ v)) = a @ (x @ w_vo + b_vo) + c
    w_to = params["wt"].T @ params["wo"].T                 # (H, 1)
    c = params["bt"] @ params["wo"].T + params["bo"]       # (1,)
    w_vo = params["wv"].T @ w_to                           # (H, 1)
    b_vo = params["bv"] @ w_to                             # (1,)

    # Q projection: 1/sqrt(H) folded in, plus a ZERO pad column so the scores
    # contraction dim matches the augmented K projection.
    wq_aug = jnp.concatenate(
        [params["wq"].T * inv_sqrt_h, jnp.zeros((H, 1), jnp.float32)], axis=1)
    bq_aug = jnp.concatenate(
        [params["bq"] * inv_sqrt_h, jnp.zeros((1,), jnp.float32)]).reshape(1, H + 1)

    # K projection with w_vo appended as an extra output column and b_vo in the bias.
    wk_aug = jnp.concatenate([params["wk"].T, w_vo], axis=1)             # (H, H+1)
    bk_aug = jnp.concatenate([params["bk"], b_vo]).reshape(1, H + 1)

    return dict(
        wq=wq_aug.astype(jnp.bfloat16),    # bf16 MXU operands
        wk=wk_aug.astype(jnp.bfloat16),
        bq=bq_aug.astype(jnp.float32),     # biases added after f32 accumulation
        bk=bk_aug.astype(jnp.float32),
        c=c.reshape(1).astype(jnp.float32),
    )


def _pick_bt(B, Sq, target_rows=512):
    """Batch rows per grid step.  bt must divide B and (for the (bt, Sq) output
    block's sublane tiling) be a multiple of 8 or equal B.  Prefer the smallest
    bt giving the projection matmul >= target_rows rows (256-wide MXU on
    v6e/v7x) while keeping >= 2 grid steps; otherwise the largest valid bt with
    >= 2 steps; otherwise B."""
    cands = [d for d in range(1, B + 1)
             if B % d == 0 and (d % 8 == 0 or d == B)]
    for d in cands:
        if d * Sq >= target_rows and B // d >= 2:
            return d
    two_step = [d for d in cands if B // d >= 2]
    if two_step:
        return max(two_step)
    # TODO(synk): pad B up to a multiple of 8 (masking padded rows) so >= 2
    # pipelined grid steps always exist; collapses to grid=1 for tiny B.
    return B


def _pick_skt(Sk, max_tile=1024):
    """Key-axis tile.  Key tiles are fully independent (softmax is over the
    query axis), so this only bounds the materialized (bt, Sq, skt) score
    block.  skt must divide Sk and be a multiple of 8 or equal Sk."""
    if Sk <= max_tile:
        return Sk
    cands = [d for d in range(8, max_tile + 1, 8) if Sk % d == 0]
    return max(cands) if cands else Sk


def twostage_attention(query_x, x, prepared, *, bt=None, skt=None):
    """query_x: (B, Sq, H), x: (B, Sk, H)  ->  (B, Sq)  (torch.squeeze semantics)."""
    B, Sq, H = query_x.shape
    _, Sk, _ = x.shape
    Ha = prepared["wq"].shape[1]
    assert Ha == H + 1

    if bt is None:
        bt = _pick_bt(B, Sq)
    if skt is None:
        skt = _pick_skt(Sk)
    assert B % bt == 0 and (bt % 8 == 0 or bt == B), (B, bt)
    assert Sk % skt == 0 and (skt % 8 == 0 or skt == Sk), (Sk, skt)

    # TODO(synk): for H >= ~1K, give the constant weight specs
    # pipeline_mode=pl.Buffered(1) (no double-buffering) and raise
    # vmem_limit_bytes; irrelevant at these sizes.
    const = lambda shape: pl.BlockSpec(shape, lambda i, j: (0, 0))

    out = pl.pallas_call(
        _twostage_kernel,
        out_shape=jax.ShapeDtypeStruct((B, Sq), jnp.float32),
        grid_spec=pltpu.PrefetchScalarGridSpec(
            num_scalar_prefetch=0,
            grid=(B // bt, Sk // skt),
            in_specs=[
                pl.BlockSpec((bt, Sq, H), lambda i, j: (i, 0, 0)),    # query_x
                pl.BlockSpec((bt, skt, H), lambda i, j: (i, j, 0)),   # x (key tiles)
                const((H, Ha)), const((1, Ha)),                       # query1 (scaled, zero-padded)
                const((H, Ha)), const((1, Ha)),                       # key1 ++ fused value/out head
                pl.BlockSpec(memory_space=pltpu.MemorySpace.SMEM),    # c scalar
            ],
            out_specs=pl.BlockSpec((bt, Sq), lambda i, j: (i, 0)),
            scratch_shapes=[pltpu.VMEM((bt, Sq, Ha), jnp.bfloat16)],
        ),
        compiler_params=pltpu.CompilerParams(
            dimension_semantics=("parallel", "arbitrary")),
    )(query_x, x, prepared["wq"], prepared["bq"], prepared["wk"],
      prepared["bk"], prepared["c"])

    # torch.squeeze removes every size-1 dim (only matters if B == 1 or Sq == 1).
    return jnp.squeeze(out)


def _init_params(key, hidden_size):
    """Deterministic init mimicking nn.Linear defaults: U(-1/sqrt(fan_in), +1/sqrt(fan_in))."""
    def linear(k, out_f, in_f):
        kw, kb = jax.random.split(k)
        bound = 1.0 / math.sqrt(in_f)
        w = jax.random.uniform(kw, (out_f, in_f), jnp.float32, -bound, bound)
        b = jax.random.uniform(kb, (out_f,), jnp.float32, -bound, bound)
        return w, b

    keys = jax.random.split(key, 5)
    wq, bq = linear(keys[0], hidden_size, hidden_size)
    wk, bk = linear(keys[1], hidden_size, hidden_size)
    wv, bv = linear(keys[2], hidden_size, hidden_size)
    wt, bt = linear(keys[3], hidden_size, hidden_size)
    wo, bo = linear(keys[4], 1, hidden_size)
    # TODO(synk): query2/key2/value2/nn_cat exist in __init__ but are dead code in forward; omitted.
    return dict(wq=wq, bq=bq, wk=wk, bk=bk, wv=wv, bv=bv,
                wt=wt, bt=bt, wo=wo, bo=bo)


def _reference(query_x, x, p):
    """Pure-JAX reference mirroring the PyTorch forward exactly (no fusion, f32)."""
    H = query_x.shape[-1]
    q = query_x @ p["wq"].T + p["bq"]
    k = x @ p["wk"].T + p["bk"]
    v = x @ p["wv"].T + p["bv"]
    s = jnp.einsum("bqh,bkh->bqk", q, k) / math.sqrt(H)
    a = jax.nn.softmax(s, axis=1)                        # dim=1 softmax (query axis)
    o = jnp.einsum("bqk,bkh->bqh", a, v)
    t = o @ p["wt"].T + p["bt"]
    y = t @ p["wo"].T + p["bo"]                          # (B, Sq, 1)
    return jnp.squeeze(y)


if __name__ == "__main__":
    B, Sq, Sk, H = 2, 8, 16, 32

    root = jax.random.PRNGKey(0)
    k_qx, k_x, k_p = jax.random.split(root, 3)
    query_x = jax.random.normal(k_qx, (B, Sq, H), jnp.float32)
    x = jax.random.normal(k_x, (B, Sk, H), jnp.float32)
    params = _init_params(k_p, H)

    prepared = prepare_params(params)        # one-time weight prep, outside the kernel

    out = twostage_attention(query_x, x, prepared)
    out = jax.block_until_ready(out)

    ref = _reference(query_x, x, params)
    assert out.shape == ref.shape == (B, Sq), (out.shape, ref.shape)
    err = float(jnp.max(jnp.abs(out - ref)))
    # Tolerance covers bf16 MXU operands, the approximate EUP reciprocal in the
    # softmax and the (exact-in-real-arithmetic) weight-fusion rounding; a real
    # bug (wrong softmax axis, wrong weight) shows up at O(0.1+).
    assert err < 3e-2, f"max abs err {err}"

    print("KERNEL_OK")
</pallas_src>

<mosaic_0001>
module attributes {stable_mosaic.version = 11 : i64} {
  func.func @_twostage_kernel(%arg0: i32, %arg1: i32, %arg2: memref<2x8x32xf32, #tpu.memory_space<vmem>>, %arg3: memref<2x16x32xf32, #tpu.memory_space<vmem>>, %arg4: memref<32x33xbf16, #tpu.memory_space<vmem>>, %arg5: memref<1x33xf32, #tpu.memory_space<vmem>>, %arg6: memref<32x33xbf16, #tpu.memory_space<vmem>>, %arg7: memref<1x33xf32, #tpu.memory_space<vmem>>, %arg8: memref<1xf32, #tpu.memory_space<smem>>, %arg9: memref<2x8xf32, #tpu.memory_space<vmem>>, %arg10: memref<2x8x33xbf16, #tpu.memory_space<vmem>>) attributes {dimension_semantics = [#tpu.dimension_semantics<parallel>, #tpu.dimension_semantics<arbitrary>], iteration_bounds = array<i64: 1, 1>, scalar_prefetch = 0 : i64, scratch_operands = 1 : i64, tpu.core_type = #tpu.core_type<tc>, window_params = [{transform_indices = @transform_0, window_bounds = array<i64: 2, 8, 32>}, {transform_indices = @transform_1, window_bounds = array<i64: 2, 16, 32>}, {pipeline_mode = #tpu.pipeline_mode<synchronous>, transform_indices = @transform_2, window_bounds = array<i64: 32, 33>}, {pipeline_mode = #tpu.pipeline_mode<synchronous>, transform_indices = @transform_3, window_bounds = array<i64: 1, 33>}, {pipeline_mode = #tpu.pipeline_mode<synchronous>, transform_indices = @transform_4, window_bounds = array<i64: 32, 33>}, {pipeline_mode = #tpu.pipeline_mode<synchronous>, transform_indices = @transform_5, window_bounds = array<i64: 1, 33>}, {transform_indices = @transform_6, window_bounds = array<i64: 1>}, {transform_indices = @transform_7, window_bounds = array<i64: 2, 8>}]} {
    %c0_i32 = arith.constant 0 : i32
    %0 = arith.cmpi eq, %arg1, %c0_i32 : i32
    %1 = arith.extui %0 : i1 to i32
    %c0_i32_0 = arith.constant 0 : i32
    %2 = arith.cmpi ne, %1, %c0_i32_0 : i32
    scf.if %2 {
      %c0_18 = arith.constant 0 : index
      %c0_19 = arith.constant 0 : index
      %c0_20 = arith.constant 0 : index
      %33 = vector.load %arg2[%c0_18, %c0_19, %c0_20] : memref<2x8x32xf32, #tpu.memory_space<vmem>>, vector<2x8x32xf32>
      %c0_21 = arith.constant 0 : index
      %c0_22 = arith.constant 0 : index
      %34 = vector.load %arg4[%c0_21, %c0_22] : memref<32x33xbf16, #tpu.memory_space<vmem>>, vector<32x33xbf16>
      %c0_23 = arith.constant 0 : index
      %c0_24 = arith.constant 0 : index
      %35 = vector.load %arg5[%c0_23, %c0_24] : memref<1x33xf32, #tpu.memory_space<vmem>>, vector<1x33xf32>
      %36 = arith.truncf %33 : vector<2x8x32xf32> to vector<2x8x32xbf16>
      %37 = vector.shape_cast %36 : vector<2x8x32xbf16> to vector<16x32xbf16>
      %cst_25 = arith.constant dense<0.000000e+00> : vector<16x33xf32>
      %38 = tpu.matmul %37, %34, %cst_25 {dimension_numbers = #tpu.dot_dimension_numbers<[1], [0], [0], [1], [0, 0, 1, 1], [], []>} : vector<16x32xbf16>, vector<32x33xbf16>, vector<16x33xf32> -> vector<16x33xf32>
      %39 = vector.shape_cast %38 : vector<16x33xf32> to vector<2x8x33xf32>
      %40 = vector.shape_cast %35 : vector<1x33xf32> to vector<1x1x33xf32>
      %41 = vector.broadcast %40 : vector<1x1x33xf32> to vector<2x8x33xf32>
      %42 = arith.addf %39, %41 : vector<2x8x33xf32>
      %43 = arith.truncf %42 : vector<2x8x33xf32> to vector<2x8x33xbf16>
      %c0_26 = arith.constant 0 : index
      %c0_27 = arith.constant 0 : index
      %c0_28 = arith.constant 0 : index
      %44 = vector.load %arg10[%c0_26, %c0_27, %c0_28] : memref<2x8x33xbf16, #tpu.memory_space<vmem>>, vector<2x8x33xbf16>
      tpu.vector_store %arg10[%c0_26, %c0_27, %c0_28], %43 {strides = array<i32>} : memref<2x8x33xbf16, #tpu.memory_space<vmem>>, vector<2x8x33xbf16>,
      %c0_29 = arith.constant 0 : index
      %45 = memref.load %arg8[%c0_29] : memref<1xf32, #tpu.memory_space<smem>>
      %46 = vector.broadcast %45 : f32 to vector<2x8xf32>
      %c0_30 = arith.constant 0 : index
      %c0_31 = arith.constant 0 : index
      %47 = vector.load %arg9[%c0_30, %c0_31] : memref<2x8xf32, #tpu.memory_space<vmem>>, vector<2x8xf32>
      tpu.vector_store %arg9[%c0_30, %c0_31], %46 {strides = array<i32>} : memref<2x8xf32, #tpu.memory_space<vmem>>, vector<2x8xf32>,
    } else {
    }
    %c0 = arith.constant 0 : index
    %c0_1 = arith.constant 0 : index
    %c0_2 = arith.constant 0 : index
    %3 = vector.load %arg3[%c0, %c0_1, %c0_2] : memref<2x16x32xf32, #tpu.memory_space<vmem>>, vector<2x16x32xf32>
    %c0_3 = arith.constant 0 : index
    %c0_4 = arith.constant 0 : index
    %4 = vector.load %arg6[%c0_3, %c0_4] : memref<32x33xbf16, #tpu.memory_space<vmem>>, vector<32x33xbf16>
    %c0_5 = arith.constant 0 : index
    %c0_6 = arith.constant 0 : index
    %5 = vector.load %arg7[%c0_5, %c0_6] : memref<1x33xf32, #tpu.memory_space<vmem>>, vector<1x33xf32>
    %6 = arith.truncf %3 : vector<2x16x32xf32> to vector<2x16x32xbf16>
    %7 = vector.shape_cast %6 : vector<2x16x32xbf16> to vector<32x32xbf16>
    %cst = arith.constant dense<0.000000e+00> : vector<32x33xf32>
    %8 = tpu.matmul %7, %4, %cst {dimension_numbers = #tpu.dot_dimension_numbers<[1], [0], [0], [1], [0, 0, 1, 1], [], []>} : vector<32x32xbf16>, vector<32x33xbf16>, vector<32x33xf32> -> vector<32x33xf32>
    %9 = vector.shape_cast %8 : vector<32x33xf32> to vector<2x16x33xf32>
    %10 = vector.shape_cast %5 : vector<1x33xf32> to vector<1x1x33xf32>
    %11 = vector.broadcast %10 : vector<1x1x33xf32> to vector<2x16x33xf32>
    %12 = arith.addf %9, %11 : vector<2x16x33xf32>
    %13 = vector.extract_strided_slice %12 {offsets = [0, 0, 32], sizes = [2, 16, 1], strides = [1, 1, 1]} : vector<2x16x33xf32> to vector<2x16x1xf32>
    %14 = vector.shape_cast %13 : vector<2x16x1xf32> to vector<2x16xf32>
    %c0_7 = arith.constant 0 : index
    %c0_8 = arith.constant 0 : index
    %c0_9 = arith.constant 0 : index
    %15 = vector.load %arg10[%c0_7, %c0_8, %c0_9] : memref<2x8x33xbf16, #tpu.memory_space<vmem>>, vector<2x8x33xbf16>
    %16 = arith.truncf %12 : vector<2x16x33xf32> to vector<2x16x33xbf16>
    "tpu.trace_start"() <{level = 10 : i32, message = "bqh,bkh->bqk"}> : () -> ()
    %cst_10 = arith.constant dense<0.000000e+00> : vector<2x8x16xf32>
    %17 = tpu.matmul %15, %16, %cst_10 {dimension_numbers = #tpu.dot_dimension_numbers<[2], [2], [1], [1], [0, 0, 0, 1, 1, 1], [0], [0]>} : vector<2x8x33xbf16>, vector<2x16x33xbf16>, vector<2x8x16xf32> -> vector<2x8x16xf32>
    "tpu.trace_stop"() : () -> ()
    %cst_11 = arith.constant dense<0xFF800000> : vector<2x16xf32>
    %18 = vector.multi_reduction <maximumf>, %17, %cst_11 [1] : vector<2x8x16xf32> to vector<2x16xf32>
    %19 = vector.shape_cast %18 : vector<2x16xf32> to vector<2x1x16xf32>
    %20 = vector.broadcast %19 : vector<2x1x16xf32> to vector<2x8x16xf32>
    %21 = arith.subf %17, %20 : vector<2x8x16xf32>
    %22 = math.exp %21 : vector<2x8x16xf32>
    %cst_12 = arith.constant dense<0.000000e+00> : vector<2x16xf32>
    %23 = vector.multi_reduction <add>, %22, %cst_12 [1] : vector<2x8x16xf32> to vector<2x16xf32>
    %24 = tpu.reciprocal %23 {approx = true} : vector<2x16xf32> -> vector<2x16xf32>
    %25 = arith.mulf %14, %24 : vector<2x16xf32>
    %c0_13 = arith.constant 0 : index
    %c0_14 = arith.constant 0 : index
    %26 = vector.load %arg9[%c0_13, %c0_14] : memref<2x8xf32, #tpu.memory_space<vmem>>, vector<2x8xf32>
    %27 = vector.shape_cast %25 : vector<2x16xf32> to vector<2x1x16xf32>
    %28 = vector.broadcast %27 : vector<2x1x16xf32> to vector<2x8x16xf32>
    %29 = arith.mulf %22, %28 : vector<2x8x16xf32>
    %cst_15 = arith.constant dense<0.000000e+00> : vector<2x8xf32>
    %30 = vector.multi_reduction <add>, %29, %cst_15 [2] : vector<2x8x16xf32> to vector<2x8xf32>
    %31 = arith.addf %26, %30 : vector<2x8xf32>
    %c0_16 = arith.constant 0 : index
    %c0_17 = arith.constant 0 : index
    %32 = vector.load %arg9[%c0_16, %c0_17] : memref<2x8xf32, #tpu.memory_space<vmem>>, vector<2x8xf32>
    tpu.vector_store %arg9[%c0_16, %c0_17], %31 {strides = array<i32>} : memref<2x8xf32, #tpu.memory_space<vmem>>, vector<2x8xf32>,
    return
  }
  func.func @transform_0(%arg0: i32, %arg1: i32) -> (i32, i32, i32) {
    %c0_i32 = arith.constant 0 : i32
    %c0_i32_0 = arith.constant 0 : i32
    %c0_i32_1 = arith.constant 0 : i32
    return %arg0, %c0_i32, %c0_i32_0 : i32, i32, i32
  }
  func.func @transform_1(%arg0: i32, %arg1: i32) -> (i32, i32, i32) {
    %c0_i32 = arith.constant 0 : i32
    %c0_i32_0 = arith.constant 0 : i32
    return %arg0, %arg1, %c0_i32 : i32, i32, i32
  }
  func.func @transform_2(%arg0: i32, %arg1: i32) -> (i32, i32) {
    %c0_i32 = arith.constant 0 : i32
    %c0_i32_0 = arith.constant 0 : i32
    %c0_i32_1 = arith.constant 0 : i32
    return %c0_i32, %c0_i32_0 : i32, i32
  }
  func.func @transform_3(%arg0: i32, %arg1: i32) -> (i32, i32) {
    %c0_i32 = arith.constant 0 : i32
    %c0_i32_0 = arith.constant 0 : i32
    %c0_i32_1 = arith.constant 0 : i32
    return %c0_i32, %c0_i32_0 : i32, i32
  }
  func.func @transform_4(%arg0: i32, %arg1: i32) -> (i32, i32) {
    %c0_i32 = arith.constant 0 : i32
    %c0_i32_0 = arith.constant 0 : i32
    %c0_i32_1 = arith.constant 0 : i32
    return %c0_i32, %c0_i32_0 : i32, i32
  }
  func.func @transform_5(%arg0: i32, %arg1: i32) -> (i32, i32) {
    %c0_i32 = arith.constant 0 : i32
    %c0_i32_0 = arith.constant 0 : i32
    %c0_i32_1 = arith.constant 0 : i32
    return %c0_i32, %c0_i32_0 : i32, i32
  }
  func.func @transform_6(%arg0: i32, %arg1: i32) -> i32 {
    %c0_i32 = arith.constant 0 : i32
    %c0_i32_0 = arith.constant 0 : i32
    return %c0_i32 : i32
  }
  func.func @transform_7(%arg0: i32, %arg1: i32) -> (i32, i32) {
    %c0_i32 = arith.constant 0 : i32
    %c0_i32_0 = arith.constant 0 : i32
    return %arg0, %c0_i32 : i32, i32
  }
}

</mosaic_0001>

<bundles_post_ra>
// kernel: tpu_custom_call.1
= control target key start
LH: loop header
LB: loop body
LE: loop exit
PB: predicated region body
PF: predicated region fallthrough
CT: control target
= control target key end

     0   :  { %13 = vsyncpa [#allocation5], 0  ;;  %s718_s0 = inlined_call_operand.hbm [shape: f32[2,8,32], index: 0, kind: input, shape index: {}]   ;;  %s719_s1 = inlined_call_operand.hbm [shape: f32[2,16,32], index: 1, kind: input, shape index: {}]   ;;  %s720_s2 = inlined_call_operand.hbm [shape: bf16[32,33], index: 2, kind: input, shape index: {}]   ;;  %s721_s3 = inlined_call_operand.vmem [shape: f32[1,33], index: 3, kind: input, shape index: {}]   ;;  %s722_s4 = inlined_call_operand.hbm [shape: bf16[32,33], index: 4, kind: input, shape index: {}]   ;;  %s723_s5 = inlined_call_operand.vmem [shape: f32[1,33], index: 5, kind: input, shape index: {}]   ;;  %s724_s6 = inlined_call_operand.<no memory space> [shape: f32[1], index: 6, kind: input, shape index: {}]   ;;  %s725_s7 = inlined_call_operand.hbm [shape: f32[2,8], index: 7, kind: output, shape index: {}]  }
   0x1   :  { %14 = vsyncpa [#allocation8], 0 }
   0x2   :  { %15 = vsyncpa [#allocation11], 0 }
   0x3   :  { %16 = vsyncpa [#allocation6], 0  ;;  %s34_s26 = sshll.u32 %s719_s1, 4  ;;  %s612_s27 = smov [#allocation7]   ;;  %s35_s26 = int_to_ptr.hbm [resolvable:$true] %s34_s26 }
   0x4   :  { %s36_s28 = sshll.u32 %s612_s27, 4  ;;  %s21_s8 = sshll.u32 %s718_s0, 4  ;;  %s37_s28 = int_to_ptr.vmem [resolvable:$true] %s36_s28  ;;  %s22_s8 = int_to_ptr.hbm [resolvable:$true] %s21_s8 }
   0x5   :  { %s613_s9 = smov 128   ;;  %s614_s10 = smov 8  }
   0x6   :  { %42 = dma.hbm_to_vmem [thread:$0]  %s35_s26, 512, %s37_s28, [#allocation8], %s613_s9, %s613_s9, %s614_s10  }
   0x7   :  { %s615_s11 = smov [#allocation4]   ;;  %s47_s15 = sshll.u32 %s720_s2, 4  ;;  %s48_s15 = int_to_ptr.hbm [resolvable:$true] %s47_s15 }
   0x8   :  { %s23_s12 = sshll.u32 %s615_s11, 4  ;;  %s616_s1 = smov [#allocation9]   ;;  %s24_s12 = int_to_ptr.vmem [resolvable:$true] %s23_s12 }
   0x9   :  { %29 = dma.hbm_to_vmem [thread:$0]  %s22_s8, 256, %s24_s12, [#allocation5], %s613_s9, %s613_s9, %s614_s10  }
   0xa   :  { %s49_s16 = sshll.u32 %s616_s1, 4  ;;  %s62_s0 = sshll.u32 %s722_s4, 4  ;;  %s50_s16 = int_to_ptr.vmem [resolvable:$true] %s49_s16  ;;  %s63_s0 = int_to_ptr.hbm [resolvable:$true] %s62_s0 }
   0xb   :  { %s617_s19 = smov 64   ;;  %s618_s20 = smov 4  }
   0xc   :  { %55 = dma.hbm_to_vmem [thread:$0]  %s48_s15, 256, %s50_s16, [#allocation8], %s617_s19, %s617_s19, %s618_s20  }
   0xd   :  { %s619_s21 = smov [#allocation10]  }
   0xe   :  { %s64_s22 = sshll.u32 %s619_s21, 4  ;;  %s65_s22 = int_to_ptr.vmem [resolvable:$true] %s64_s22 }
   0xf   :  { %70 = dma.hbm_to_vmem [thread:$0]  %s63_s0, 256, %s65_s22, [#allocation11], %s617_s19, %s617_s19, %s618_s20  }
  0x10   :  { %604 = dma.done.wait [#allocation5], 256  }
  0x11   :  { %605 = vsyncadd [#allocation5], 4294967040 }
  0x12   :  { %606 = dma.done.wait [#allocation8], 768  }
  0x13   :  { %607 = vsyncadd [#allocation8], 4294966528 }
  0x14   :  { %608 = dma.done.wait [#allocation11], 256  }
  0x15   :  { %609 = vsyncadd [#allocation11], 4294967040  ;;  %v456_v0 = vld [vmem:[#allocation10 + $0x8] sm:$0xff]  ;;  %v154_v1 = vld [vmem:[#allocation7] sm:$0xff]  ;;  %vm122_vm0 = vcmask 261120   ;;  %vm147_vm1 = vcmask 265216   ;;  %v316_v57 = vlaneseq }
  0x16   :  { %v155_v2 = vld [vmem:[#allocation7 + $0x8] sm:$0xff]  ;;  %v163_v3 = vpack.c.bf16 %v154_v1, %v154_v1  ;;  %202 = vmatpush.bf16.msra.mxu1 %v456_v0  ;;  %v455_v5 = vld [vmem:[#allocation10] sm:$0xff]  ;;  %v97_v8 = vld [vmem:[#allocation4 + $0x8] sm:$0xff]  ;;  %vm233_vm2 = vcmask 269312   ;;  %vm277_vm3 = vcmask 130048   ;;  %vm370_vm4 = vcmask 130112  }
  0x17   :  { %v454_v4 = vld [vmem:[#allocation9 + $0x8] sm:$0xff]  ;;  %v164_v6 = vpack.c.bf16 %v155_v2, %v155_v2  ;;  %v96_v7 = vld [vmem:[#allocation4] sm:$0xff]  ;;  %v453_v10 = vld [vmem:[#allocation9] sm:$0xff]  ;;  %v104_v12 = vpack.c.bf16 %v97_v8, %v97_v8  ;;  %v317_v59 = vshrl.u32 %v316_v57, 7  ;;  %vm152_vm5 = vcmask 58368   ;;  %s621_s25 = smov [#allocation12]  }
  0x18   :  { %v171_v9 = vunpack.c.l.b16 %v163_v3  ;;  %132 = vmatpush.bf16.msra.mxu0 %v454_v4  ;;  %v103_v11 = vpack.c.bf16 %v96_v7, %v96_v7  ;;  %v156_v18 = vld [vmem:[#allocation7 + $0x10] sm:$0xff]  ;;  %v157_v19 = vld [vmem:[#allocation7 + $0x18] sm:$0xff]  ;;  %v475_v25 = vld [vmem:[%s721_s3] ss:$0 sm:$0xff]  ;;  %vm375_vm6 = vcmask 1041409   ;;  %s418_s26 = sshll.u32 %s621_s25, 4  ;;  %s419_s26 = int_to_ptr.vmem [resolvable:$true] %s418_s26 }
  0x19   :  { %v172_v13 = vunpack.c.l.b16 %v164_v6  ;;  %v108_v15 = vunpack.c.l.b16 %v104_v12  ;;  %v165_v20 = vpack.c.bf16 %v156_v18, %v156_v18  ;;  %v166_v21 = vpack.c.bf16 %v157_v19, %v157_v19  ;;  %v474_v27 = vld [vmem:[%s723_s5] ss:$0 sm:$0xff]  ;;  %467 = vset.pattern.permute.xlu0 %v317_v59  ;;  %469 = vset.pattern.permute.xlu1 %v317_v59  ;;  %s420_s29 = sshll.u32 %s725_s7, 4  ;;  %s421_s29 = int_to_ptr.hbm [resolvable:$true] %s420_s29 }
  0x1a   :  { %v107_v14 = vunpack.c.l.b16 %v103_v11  ;;  %203 = vmatpush.bf16.msra.mxu1 %v455_v5 }
  0x1b   :  { %v175_v16 = vpack.c.b16 %v172_v13, %v171_v9  ;;  %v173_v22 = vunpack.c.l.b16 %v165_v20  ;;  %v174_v23 = vunpack.c.l.b16 %v166_v21 }
  0x1c   :  { %133 = vmatpush.bf16.msra.mxu0 %v453_v10  ;;  %v109_v17 = vpack.c.b16 %v108_v15, %v107_v14 }
  0x1d   :  { %449 = vmatmul.msk.bf16.vlgmr.msra.gmra.mxu1 %vm122_vm0, %v175_v16  ;;  %v176_v24 = vpack.c.b16 %v174_v23, %v173_v22 }
  0x1f   :  { %440 = vmatmul.msk.bf16.vlgmr.msra.gmra.mxu0 %vm122_vm0, %v109_v17 }
  0x2d   :  { %450 = vmatmul.msk.bf16.gmra.mxu1 %vm122_vm0, %v176_v24 }
  0x9a   :  { %v205_v26 = vpop.f32.mrf.mxu1 }
  0x9b   :  { %v680_v31 = vadd.f32 %v474_v27, %v205_v26 }
  0x9c   :  { %v135_v28 = vpop.f32.mrf.mxu0 }
  0x9d   :  { %v143_v29 = vadd.f32 %v475_v25, %v135_v28  ;;  %v224_v33 = vpack.c.bf16 %v680_v31, %v680_v31 }
  0x9f   :  { %v145_v30 = vpack.c.bf16 %v143_v29, %v143_v29  ;;  %v230_v39 = vunpack.c.l.b16 %v224_v33 }
  0xa1   :  { %148 = vst.msk [vmem:[#allocation2] sm:$0xf] %vm147_vm1, %v145_v30  ;;  %v324_v30 = vadd.s32 8, %v317_v59 }
  0xa2   :  { %v207_v32 = vpop.f32.mrf.mxu1 }
  0xa3   :  { %v684_v34 = vadd.f32 %v474_v27, %v207_v32 }
  0xa4   :  { %v137_v35 = vpop.f32.mrf.mxu0 }
  0xa5   :  { %v144_v36 = vadd.f32 %v475_v25, %v137_v35  ;;  %v225_v37 = vpack.c.bf16 %v684_v34, %v684_v34 }
  0xa7   :  { %v146_v38 = vpack.c.bf16 %v144_v36, %v144_v36  ;;  %v231_v40 = vunpack.c.l.b16 %v225_v37  ;;  %v620_v36 = vmov 32  }
  0xa8   :  { %v222_v45 = vld [vmem:[#allocation2] sm:$0xf]  ;;  %471 = vset.pattern.permute.xlu2 %v620_v36 }
  0xa9   :  { %149 = vst.msk [vmem:[#allocation2 + $0x4] sm:$0xf] %vm147_vm1, %v146_v38  ;;  %v232_v41 = vpack.c.b16 %v231_v40, %v230_v39 }
  0xaa   :  { %v210_v42 = vpop.f32.mrf.mxu1 }
  0xab   :  { %v238_v43 = vsel %vm233_vm2, %v232_v41, 0  ;;  %v689_v44 = vadd.f32 %v474_v27, %v210_v42 }
  0xac   :  { %247 = vmatpush.bf16.xpose.msra.mxu2 %v238_v43 }
  0xad   :  { %v226_v47 = vpack.c.bf16 %v689_v44, %v689_v44 }
  0xaf   :  { %v255_v50 = vunpack.c.l.b16 %v226_v47  ;;  %v366_v47 = vand.u32 127, %v316_v57  ;;  %v151_v57 = vstv %s724_s6 }
  0xb0   :  { %v223_v54 = vld [vmem:[#allocation2 + $0x4] sm:$0xf]  ;;  %153 = vst.msk [vmem:[#allocation12] sm:$0x3] %vm152_vm5, %v151_v57 }
  0xb2   :  { %v212_v46 = vpop.f32.mrf.mxu1 }
  0xb3   :  { %v693_v48 = vadd.f32 %v474_v27, %v212_v46  ;;  %451 = vmatmul.msk.bf16.vlgmr.msra.gmra.mxu2 %vm233_vm2, %v222_v45 }
  0xb5   :  { %v227_v49 = vpack.c.bf16 %v693_v48, %v693_v48 }
  0xb7   :  { %v256_v51 = vunpack.c.l.b16 %v227_v49  ;;  %v368_v49 = vadd.s32 4294967288, %v366_v47 }
  0xb9   :  { %v257_v52 = vpack.c.b16 %v256_v51, %v255_v50 }
  0xbb   :  { %v262_v53 = vsel %vm233_vm2, %v257_v52, 0 }
  0xbc   :  { %271 = vmatpush.bf16.xpose.msra.mxu3 %v262_v53 }
  0xc3   :  { %452 = vmatmul.msk.bf16.vlgmr.msra.gmra.mxu3 %vm233_vm2, %v223_v54 }
 0x136   :  { %v249_v55 = vpop.f32.mrf.mxu2 }
 0x137   :  { %v278_v56 = vsel %vm277_vm3, %v249_v55, -inf }
 0x138   :  { %v279_v58 = vrot.slane %v278_v56, 4 }
 0x13a   :  { %v280_v60 = vmax.f32 %v278_v56, %v279_v58 }
 0x13c   :  { %v281_v61 = vrot.slane %v280_v60, 2 }
 0x13e   :  { %v282_v62 = vmax.f32 %v280_v60, %v281_v61  ;;  %v251_v63 = vpop.f32.mrf.mxu2 }
 0x13f   :  { %v348_v63 = vld [vmem:[#allocation12] sm:$0x3] }
 0x140   :  { %v283_v0 = vrot.slane %v282_v62, 1 }
 0x142   :  { %v284_v1 = vmax.f32 %v282_v62, %v283_v0 }
 0x144   :  { %v292_v2 = vsub.f32 %v249_v55, %v284_v1 }
 0x146   :  { %v294_v3 = vmul.f32 1.442695, %v292_v2  ;;  %v273_v4 = vpop.f32.mrf.mxu3 }
 0x147   :  { %v285_v5 = vsel %vm277_vm3, %v273_v4, -inf }
 0x148   :  { %476 = vpow2.f32 %v294_v3  ;;  %v286_v6 = vrot.slane %v285_v5, 4 }
 0x14a   :  { %v287_v7 = vmax.f32 %v285_v5, %v286_v6 }
 0x14c   :  { %v288_v8 = vrot.slane %v287_v7, 2 }
 0x14e   :  { %v477_v9 = vpop.eup %476  ;;  %v289_v10 = vmax.f32 %v287_v7, %v288_v8  ;;  %v275_v11 = vpop.f32.mrf.mxu3 }
 0x14f   :  { %v298_v12 = vsel %vm277_vm3, %v477_v9, 0.0 }
 0x150   :  { %v299_v13 = vrot.slane %v298_v12, 4  ;;  %v290_v14 = vrot.slane %v289_v10, 1 }
 0x152   :  { %v300_v15 = vadd.f32 %v299_v13, %v298_v12  ;;  %v291_v16 = vmax.f32 %v289_v10, %v290_v14 }
 0x154   :  { %v293_v17 = vsub.f32 %v273_v4, %v291_v16  ;;  %v301_v18 = vrot.slane %v300_v15, 2 }
 0x156   :  { %v296_v19 = vmul.f32 1.442695, %v293_v17  ;;  %v302_v20 = vadd.f32 %v301_v18, %v300_v15 }
 0x158   :  { %478 = vpow2.f32 %v296_v19  ;;  %v303_v21 = vrot.slane %v302_v20, 1 }
 0x15a   :  { %v304_v22 = vadd.f32 %v303_v21, %v302_v20 }
 0x15c   :  { %480 = vrcp.f32 %v304_v22 }
 0x15e   :  { %v479_v23 = vpop.eup %478 }
 0x15f   :  { %v305_v24 = vsel %vm277_vm3, %v479_v23, 0.0 }
 0x160   :  { %v306_v25 = vrot.slane %v305_v24, 4 }
 0x162   :  { %v481_v26 = vpop.eup %480  ;;  %v307_v27 = vadd.f32 %v306_v25, %v305_v24 }
 0x163   :  { %320 = vperm.xlu0 %467, %v481_v26  }
 0x164   :  { %v308_v28 = vrot.slane %v307_v27, 2 }
 0x166   :  { %v309_v29 = vadd.f32 %v308_v28, %v307_v27 }
 0x168   :  { %v310_v32 = vrot.slane %v309_v29, 1 }
 0x16a   :  { %v311_v33 = vadd.f32 %v310_v32, %v309_v29 }
 0x16b   :  { %468 = vset.pattern.permute.xlu0 %v324_v30 }
 0x16c   :  { %482 = vrcp.f32 %v311_v33 }
 0x172   :  { %v483_v35 = vpop.eup %482 }
 0x173   :  { %326 = vperm.xlu0 %468, %v481_v26   ;;  %332 = vperm.xlu1 %469, %v483_v35  }
 0x17b   :  { %470 = vset.pattern.permute.xlu1 %v324_v30  ;;  %473 = vset.pattern.permute.xlu0 %v620_v36 }
 0x183   :  { %338 = vperm.xlu1 %470, %v483_v35  }
 0x18b   :  { %472 = vset.pattern.permute.xlu1 %v620_v36 }
 0x1d5   :  { %v321_v37 = vpop.permute.xlu0 %320 }
 0x1d6   :  { %v344_v38 = vmul.f32 %v321_v37, %v680_v31 }
 0x1d8   :  { %354 = vperm.xlu2 %471, %v344_v38  }
 0x1e5   :  { %v327_v39 = vpop.permute.xlu0 %326  ;;  %v333_v40 = vpop.permute.xlu1 %332 }
 0x1e6   :  { %v345_v41 = vmul.f32 %v327_v39, %v684_v34  ;;  %v346_v42 = vmul.f32 %v333_v40, %v689_v44 }
 0x1e8   :  { %357 = vperm.xlu2 %471, %v345_v41   ;;  %360 = vperm.xlu1 %472, %v346_v42  }
 0x1f5   :  { %v339_v43 = vpop.permute.xlu1 %338 }
 0x1f6   :  { %v347_v45 = vmul.f32 %v339_v43, %v693_v48 }
 0x1f8   :  { %363 = vperm.xlu2 %471, %v347_v45  }
 0x232   :  { %v355_v46 = vpop.permute.xlu2 %354 }
 0x233   :  { %v367_v31 = vperm.slane %v355_v46, %v366_v47 }
 0x242   :  { %v358_v50 = vpop.permute.xlu2 %357 }
 0x243   :  { %v369_v51 = vperm.slane %v358_v50, %v368_v49 }
 0x245   :  { %v371_v52 = vsel %vm370_vm4, %v369_v51, %v367_v31 }
 0x246   :  { %v396_v53 = vmul.f32 %v477_v9, %v371_v52 }
 0x248   :  { %v398_v34 = vsel %vm277_vm3, %v396_v53, 0.0 }
 0x249   :  { %399 = vadd.xlane.f32.xlu0 %v398_v34 }
 0x252   :  { %v364_v44 = vpop.permute.xlu2 %363 }
 0x253   :  { %v373_v55 = vperm.slane %v364_v44, %v368_v49 }
 0x25a   :  { %v361_v54 = vpop.permute.xlu1 %360 }
 0x25b   :  { %v372_v56 = vperm.slane %v361_v54, %v366_v47 }
 0x25d   :  { %v374_v58 = vsel %vm370_vm4, %v373_v55, %v372_v56 }
 0x25e   :  { %v397_v48 = vmul.f32 %v479_v23, %v374_v58 }
 0x260   :  { %v401_v59 = vsel %vm277_vm3, %v397_v48, 0.0 }
 0x261   :  { %402 = vadd.xlane.f32.xlu1 %v401_v59 }
 0x2bc   :  { %v400_v60 = vpop.xlane.xlu0 %399 }
 0x2bd   :  { %v406_v62 = vperm.slane %v400_v60, %v366_v47 }
 0x2d4   :  { %v403_v61 = vpop.xlane.xlu1 %402 }
 0x2d5   :  { %v407_v0 = vperm.slane %v403_v61, %v366_v47 }
 0x2d7   :  { %v408_v1 = vsel %vm375_vm6, %v407_v0, %v406_v62 }
 0x2d8   :  { %v410_v2 = vadd.f32 %v408_v1, %v348_v63 }
 0x2da   :  { %412 = vst.msk [vmem:[#allocation12] sm:$0x3] %vm152_vm5, %v410_v2 }
 0x2db   :  { %423 = dma.vmem_to_hbm [thread:$0]  %s419_s26, 32, %s421_s29, [#allocation6]  }
 0x2dc   :  { %610 = dma.done.wait [#allocation6], 32  }
 0x2dd   :  { %611 = vsyncadd [#allocation6], 4294967264 }
 0x2de   :  { %428 = vsyncpa [#allocation5], 1 }
 0x2df   :  { %429 = vsyncpa [#allocation8], 1 }
 0x2e0   :  { %430 = vsyncpa [#allocation11], 1 }
 0x2e1   :  { %431 = vsyncpa [#allocation6], 1 }

</bundles_post_ra>
